<compile_context>
chip_gen: v7x
topology: tpu7x:2x2x1
jax: 0.10.0
libtpu: 0.0.40
codegen_flags: <defaults>
</compile_context>

<pallas_src>
import jax
import jax.numpy as jnp
from jax.experimental import pallas as pl
from jax.experimental.pallas import tpu as pltpu


def _round_up(x, m):
    return ((x + m - 1) // m) * m


def mlp_kernel(x1_ref, x2_ref, embed_ref, w1t_ref, w2t_ref, out_ref):
    tb = x1_ref.shape[0]
    vp = embed_ref.shape[0]
    e_dt = embed_ref.dtype   # gather-matmul operand dtype (f32 default => exact gather)
    w_dt = w1t_ref.dtype     # heavy-matmul operand dtype (bf16 default; f32 acc always)

    # Summed one-hot selector (TB, Vp): exact row gather + add, consumed by the MXU.
    # TODO(synk): for large vocab (Vp >> 128) replace this one-hot matmul with a
    # scalar-prefetch row gather (pl.Element blocks) + VPU add: O(B*E) vs O(B*Vp*Ep).
    col = jax.lax.broadcasted_iota(jnp.int32, (tb, vp), 1)
    sel = ((x1_ref[...] == col).astype(e_dt) + (x2_ref[...] == col).astype(e_dt))

    # e = e1 + e2 = (onehot(x1)+onehot(x2)) @ embedding            (TB, Ep), f32 accum
    e = jnp.dot(sel, embed_ref[...], preferred_element_type=jnp.float32)
    # linear1 applied once to the pre-summed embeddings            (TB, Hp)
    h = jnp.dot(e.astype(w_dt), w1t_ref[...], preferred_element_type=jnp.float32)
    # Exact GELU (PyTorch nn.GELU() default), kept in f32 on VPU/EUP.
    g = 0.5 * h * (1.0 + jax.lax.erf(h * jnp.float32(0.7071067811865476)))
    # linear2                                                      (TB, Vp)
    y = jnp.dot(g.astype(w_dt), w2t_ref[...], preferred_element_type=jnp.float32)
    out_ref[...] = y.astype(out_ref.dtype)


def prepare_mlp_params(embed_w, w1, w2, *,
                       compute_dtype=jnp.bfloat16, embed_dtype=jnp.float32):
    """Layout plumbing hoisted out of the hot path: pad + pre-transpose ONCE.

    embed_w: (V, E); w1: (H, E); w2: (V, H)  (torch nn.Linear layout).
    Embedding stays in `embed_dtype` (f32 default) so the fused gather is exact;
    the two heavy matmul operands use `compute_dtype` (bf16 default, f32 accum).
    """
    V, E = embed_w.shape
    H = w1.shape[0]
    assert w1.shape == (H, E) and w2.shape == (V, H)
    Vp, Ep, Hp = (_round_up(d, 128) for d in (V, E, H))

    embed_p = jnp.zeros((Vp, Ep), embed_dtype).at[:V, :E].set(embed_w.astype(embed_dtype))
    w1t_p = jnp.zeros((Ep, Hp), compute_dtype).at[:E, :H].set(w1.T.astype(compute_dtype))
    w2t_p = jnp.zeros((Hp, Vp), compute_dtype).at[:H, :V].set(w2.T.astype(compute_dtype))

    return dict(embed_p=embed_p, w1t_p=w1t_p, w2t_p=w2t_p,
                V=V, E=E, H=H, Vp=Vp, Ep=Ep, Hp=Hp)


def mlp_unchunked_forward(x1, x2, params, *, block_b=512,
                          out_dtype=jnp.float32, single_buffer_weights=True):
    """x1, x2: (B,) int token indices.  params: output of prepare_mlp_params.
    Returns logits (B, V) in out_dtype (f32 default)."""
    embed_p, w1t_p, w2t_p = params["embed_p"], params["w1t_p"], params["w2t_p"]
    V, Vp, Ep, Hp = params["V"], params["Vp"], params["Ep"], params["Hp"]
    B = x1.shape[0]

    # Batch tile: big enough to amortize per-grid-step overhead and fill the
    # 256-row MXU on v6e/v7x, but guaranteeing >= 2 grid steps for large B so
    # v7x's two TensorCores both get work.  Always a multiple of 16 (bf16-safe).
    if B >= 256:
        TB = min(block_b, _round_up(pl.cdiv(B, 2), 128))
    else:
        TB = _round_up(max(B, 16), 16)
    Bp = _round_up(B, TB)
    grid = (Bp // TB,)

    x1p = jnp.zeros((Bp, 1), jnp.int32).at[:B, 0].set(x1.astype(jnp.int32))
    x2p = jnp.zeros((Bp, 1), jnp.int32).at[:B, 0].set(x2.astype(jnp.int32))

    e_sz = embed_p.dtype.itemsize
    w_sz = w1t_p.dtype.itemsize
    o_sz = jnp.dtype(out_dtype).itemsize
    weight_bufs = 1 if single_buffer_weights else 2
    vmem_needed = (weight_bufs * (Vp * Ep * e_sz + (Ep * Hp + Hp * Vp) * w_sz)
                   + 2 * TB * Vp * o_sz            # double-buffered output tile
                   + 2 * 2 * TB * 4                # double-buffered index tiles
                   + 8 * TB * max(Vp, Ep, Hp) * 4)  # in-kernel intermediates
    vmem_limit = int(min(96 << 20, max(32 << 20, vmem_needed + (8 << 20))))

    flops = 2 * Bp * (Vp * Ep + Ep * Hp + Hp * Vp)
    bytes_accessed = (2 * Bp * 4
                      + Vp * Ep * e_sz + (Ep * Hp + Hp * Vp) * w_sz
                      + Bp * Vp * o_sz)
    cost = pl.CostEstimate(flops=flops, transcendentals=Bp * Hp,
                           bytes_accessed=bytes_accessed)

    def call(weight_pipeline_mode):
        wkw = {} if weight_pipeline_mode is None else dict(pipeline_mode=weight_pipeline_mode)
        return pl.pallas_call(
            mlp_kernel,
            out_shape=jax.ShapeDtypeStruct((Bp, Vp), out_dtype),
            grid=grid,
            in_specs=[
                pl.BlockSpec((TB, 1), lambda i: (i, 0)),          # x1 indices
                pl.BlockSpec((TB, 1), lambda i: (i, 0)),          # x2 indices
                pl.BlockSpec((Vp, Ep), lambda i: (0, 0), **wkw),  # embedding, resident
                pl.BlockSpec((Ep, Hp), lambda i: (0, 0), **wkw),  # W1.T, resident
                pl.BlockSpec((Hp, Vp), lambda i: (0, 0), **wkw),  # W2.T, resident
            ],
            out_specs=pl.BlockSpec((TB, Vp), lambda i: (i, 0)),   # lane-dense store
            compiler_params=pltpu.CompilerParams(
                dimension_semantics=("parallel",),
                vmem_limit_bytes=vmem_limit),
            cost_estimate=cost,
        )(x1p, x2p, embed_p, w1t_p, w2t_p)

    if single_buffer_weights:
        try:
            # Constant-index weight blocks: single-buffered (halves resident weight VMEM).
            out = call(pl.Buffered(1))
        except Exception:
            # Fallback for jax versions that reject buffer_count=1 lowering.
            out = call(None)
    else:
        out = call(None)

    return out[:B, :V]


def reference_forward(x1, x2, embed_w, w1, w2):
    e1 = embed_w[x1]
    e2 = embed_w[x2]
    h = e1 @ w1.T + e2 @ w1.T
    g = jax.nn.gelu(h, approximate=False)
    return g @ w2.T


if __name__ == "__main__":
    # Small, deterministic shapes consistent with MLP_unchunked(embed_dim, vocab_size, hidden_dim).
    vocab_size = 24
    embed_dim = 16
    hidden_dim = 32
    batch = 8

    key = jax.random.PRNGKey(0)
    k_emb, k_w1, k_w2, k_x1, k_x2 = jax.random.split(key, 5)

    # Deterministic parameter init (nn.Embedding ~ N(0,1); nn.Linear ~ small uniform).
    embed_w = jax.random.normal(k_emb, (vocab_size, embed_dim), dtype=jnp.float32)
    w1 = jax.random.uniform(
        k_w1, (hidden_dim, embed_dim), dtype=jnp.float32,
        minval=-(1.0 / embed_dim) ** 0.5, maxval=(1.0 / embed_dim) ** 0.5)
    w2 = jax.random.uniform(
        k_w2, (vocab_size, hidden_dim), dtype=jnp.float32,
        minval=-(1.0 / hidden_dim) ** 0.5, maxval=(1.0 / hidden_dim) ** 0.5)

    x1 = jax.random.randint(k_x1, (batch,), 0, vocab_size, dtype=jnp.int32)
    x2 = jax.random.randint(k_x2, (batch,), 0, vocab_size, dtype=jnp.int32)

    ref = reference_forward(x1, x2, embed_w, w1, w2)

    # f32 compute path: bit-accurate check vs reference.
    params_f32 = prepare_mlp_params(embed_w, w1, w2, compute_dtype=jnp.float32)
    out_f32 = jax.block_until_ready(mlp_unchunked_forward(x1, x2, params_f32))
    assert out_f32.shape == (batch, vocab_size)
    assert jnp.allclose(out_f32, ref, atol=1e-5, rtol=1e-5), "f32 mismatch vs reference"

    # Default path: bf16 MXU operands for the heavy matmuls, f32 gather/accum/GELU.
    params_bf16 = prepare_mlp_params(embed_w, w1, w2)  # compute_dtype=bf16 default
    out_bf16 = jax.block_until_ready(mlp_unchunked_forward(x1, x2, params_bf16))
    assert out_bf16.shape == (batch, vocab_size)
    assert jnp.allclose(out_bf16, ref, atol=1e-1, rtol=1e-1), "bf16 mismatch vs reference"

    # Larger batch: exercises the multi-step parallel grid (>=2 steps, v7x both TCs).
    big_b = 1024
    kx1b, kx2b = jax.random.split(jax.random.PRNGKey(1))
    x1b = jax.random.randint(kx1b, (big_b,), 0, vocab_size, dtype=jnp.int32)
    x2b = jax.random.randint(kx2b, (big_b,), 0, vocab_size, dtype=jnp.int32)
    out_big = jax.block_until_ready(mlp_unchunked_forward(x1b, x2b, params_bf16))
    ref_big = reference_forward(x1b, x2b, embed_w, w1, w2)
    assert out_big.shape == (big_b, vocab_size)
    assert jnp.allclose(out_big, ref_big, atol=1e-1, rtol=1e-1), "large-batch mismatch"

    print("KERNEL_OK")
</pallas_src>

<mosaic_0001>
module attributes {stable_mosaic.version = 11 : i64} {
  func.func @mlp_kernel(%arg0: i32, %arg1: memref<16x1xi32, #tpu.memory_space<vmem>>, %arg2: memref<16x1xi32, #tpu.memory_space<vmem>>, %arg3: memref<128x128xf32, #tpu.memory_space<vmem>>, %arg4: memref<128x128xf32, #tpu.memory_space<vmem>>, %arg5: memref<128x128xf32, #tpu.memory_space<vmem>>, %arg6: memref<16x128xf32, #tpu.memory_space<vmem>>) attributes {dimension_semantics = [#tpu.dimension_semantics<parallel>], iteration_bounds = array<i64: 1>, scalar_prefetch = 0 : i64, scratch_operands = 0 : i64, tpu.core_type = #tpu.core_type<tc>, window_params = [{transform_indices = @transform_0, window_bounds = array<i64: 16, 1>}, {transform_indices = @transform_1, window_bounds = array<i64: 16, 1>}, {pipeline_mode = #tpu.pipeline_mode<synchronous>, transform_indices = @transform_2, window_bounds = array<i64: 128, 128>}, {pipeline_mode = #tpu.pipeline_mode<synchronous>, transform_indices = @transform_3, window_bounds = array<i64: 128, 128>}, {pipeline_mode = #tpu.pipeline_mode<synchronous>, transform_indices = @transform_4, window_bounds = array<i64: 128, 128>}, {transform_indices = @transform_5, window_bounds = array<i64: 16, 128>}]} {
    %0 = tpu.iota {dimensions = array<i32: 1>} : vector<16x128xi32>
    %c0 = arith.constant 0 : index
    %c0_0 = arith.constant 0 : index
    %1 = vector.load %arg1[%c0, %c0_0] : memref<16x1xi32, #tpu.memory_space<vmem>>, vector<16x1xi32>
    %2 = vector.broadcast %1 : vector<16x1xi32> to vector<16x128xi32>
    %3 = arith.cmpi eq, %2, %0 : vector<16x128xi32>
    %4 = arith.extui %3 : vector<16x128xi1> to vector<16x128xi32>
    %5 = arith.sitofp %4 : vector<16x128xi32> to vector<16x128xf32>
    %c0_1 = arith.constant 0 : index
    %c0_2 = arith.constant 0 : index
    %6 = vector.load %arg2[%c0_1, %c0_2] : memref<16x1xi32, #tpu.memory_space<vmem>>, vector<16x1xi32>
    %7 = vector.broadcast %6 : vector<16x1xi32> to vector<16x128xi32>
    %8 = arith.cmpi eq, %7, %0 : vector<16x128xi32>
    %9 = arith.extui %8 : vector<16x128xi1> to vector<16x128xi32>
    %10 = arith.sitofp %9 : vector<16x128xi32> to vector<16x128xf32>
    %11 = arith.addf %5, %10 : vector<16x128xf32>
    %c0_3 = arith.constant 0 : index
    %c0_4 = arith.constant 0 : index
    %12 = vector.load %arg3[%c0_3, %c0_4] : memref<128x128xf32, #tpu.memory_space<vmem>>, vector<128x128xf32>
    %cst = arith.constant dense<0.000000e+00> : vector<16x128xf32>
    %13 = tpu.matmul %11, %12, %cst {dimension_numbers = #tpu.dot_dimension_numbers<[1], [0], [0], [1], [0, 0, 1, 1], [], []>} : vector<16x128xf32>, vector<128x128xf32>, vector<16x128xf32> -> vector<16x128xf32>
    %c0_5 = arith.constant 0 : index
    %c0_6 = arith.constant 0 : index
    %14 = vector.load %arg4[%c0_5, %c0_6] : memref<128x128xf32, #tpu.memory_space<vmem>>, vector<128x128xf32>
    %cst_7 = arith.constant dense<0.000000e+00> : vector<16x128xf32>
    %15 = tpu.matmul %13, %14, %cst_7 {dimension_numbers = #tpu.dot_dimension_numbers<[1], [0], [0], [1], [0, 0, 1, 1], [], []>} : vector<16x128xf32>, vector<128x128xf32>, vector<16x128xf32> -> vector<16x128xf32>
    %cst_8 = arith.constant 5.000000e-01 : f32
    %16 = vector.broadcast %cst_8 : f32 to vector<16x128xf32>
    %17 = arith.mulf %16, %15 : vector<16x128xf32>
    %cst_9 = arith.constant 0.707106769 : f32
    %18 = vector.broadcast %cst_9 : f32 to vector<16x128xf32>
    %19 = arith.mulf %15, %18 : vector<16x128xf32>
    %20 = math.erf %19 : vector<16x128xf32>
    %cst_10 = arith.constant 1.000000e+00 : f32
    %21 = vector.broadcast %cst_10 : f32 to vector<16x128xf32>
    %22 = arith.addf %21, %20 : vector<16x128xf32>
    %23 = arith.mulf %17, %22 : vector<16x128xf32>
    %c0_11 = arith.constant 0 : index
    %c0_12 = arith.constant 0 : index
    %24 = vector.load %arg5[%c0_11, %c0_12] : memref<128x128xf32, #tpu.memory_space<vmem>>, vector<128x128xf32>
    %cst_13 = arith.constant dense<0.000000e+00> : vector<16x128xf32>
    %25 = tpu.matmul %23, %24, %cst_13 {dimension_numbers = #tpu.dot_dimension_numbers<[1], [0], [0], [1], [0, 0, 1, 1], [], []>} : vector<16x128xf32>, vector<128x128xf32>, vector<16x128xf32> -> vector<16x128xf32>
    %c0_14 = arith.constant 0 : index
    %c0_15 = arith.constant 0 : index
    %26 = vector.load %arg6[%c0_14, %c0_15] : memref<16x128xf32, #tpu.memory_space<vmem>>, vector<16x128xf32>
    tpu.vector_store %arg6[%c0_14, %c0_15], %25 {strides = array<i32>} : memref<16x128xf32, #tpu.memory_space<vmem>>, vector<16x128xf32>,
    return
  }
  func.func @transform_0(%arg0: i32) -> (i32, i32) {
    %c0_i32 = arith.constant 0 : i32
    %c0_i32_0 = arith.constant 0 : i32
    return %arg0, %c0_i32 : i32, i32
  }
  func.func @transform_1(%arg0: i32) -> (i32, i32) {
    %c0_i32 = arith.constant 0 : i32
    %c0_i32_0 = arith.constant 0 : i32
    return %arg0, %c0_i32 : i32, i32
  }
  func.func @transform_2(%arg0: i32) -> (i32, i32) {
    %c0_i32 = arith.constant 0 : i32
    %c0_i32_0 = arith.constant 0 : i32
    %c0_i32_1 = arith.constant 0 : i32
    return %c0_i32, %c0_i32_0 : i32, i32
  }
  func.func @transform_3(%arg0: i32) -> (i32, i32) {
    %c0_i32 = arith.constant 0 : i32
    %c0_i32_0 = arith.constant 0 : i32
    %c0_i32_1 = arith.constant 0 : i32
    return %c0_i32, %c0_i32_0 : i32, i32
  }
  func.func @transform_4(%arg0: i32) -> (i32, i32) {
    %c0_i32 = arith.constant 0 : i32
    %c0_i32_0 = arith.constant 0 : i32
    %c0_i32_1 = arith.constant 0 : i32
    return %c0_i32, %c0_i32_0 : i32, i32
  }
  func.func @transform_5(%arg0: i32) -> (i32, i32) {
    %c0_i32 = arith.constant 0 : i32
    %c0_i32_0 = arith.constant 0 : i32
    return %arg0, %c0_i32 : i32, i32
  }
}

module attributes {stable_mosaic.version = 11 : i64} {
  func.func @mlp_kernel(%arg0: i32, %arg1: memref<16x1xi32, #tpu.memory_space<vmem>>, %arg2: memref<16x1xi32, #tpu.memory_space<vmem>>, %arg3: memref<128x128xf32, #tpu.memory_space<vmem>>, %arg4: memref<128x128xf32, #tpu.memory_space<vmem>>, %arg5: memref<128x128xf32, #tpu.memory_space<vmem>>, %arg6: memref<16x128xf32, #tpu.memory_space<vmem>>) attributes {dimension_semantics = [#tpu.dimension_semantics<parallel>], iteration_bounds = array<i64: 1>, scalar_prefetch = 0 : i64, scratch_operands = 0 : i64, tpu.core_type = #tpu.core_type<tc>, window_params = [{transform_indices = @transform_0, window_bounds = array<i64: 16, 1>}, {transform_indices = @transform_1, window_bounds = array<i64: 16, 1>}, {pipeline_mode = #tpu.pipeline_mode<synchronous>, transform_indices = @transform_2, window_bounds = array<i64: 128, 128>}, {pipeline_mode = #tpu.pipeline_mode<synchronous>, transform_indices = @transform_3, window_bounds = array<i64: 128, 128>}, {pipeline_mode = #tpu.pipeline_mode<synchronous>, transform_indices = @transform_4, window_bounds = array<i64: 128, 128>}, {transform_indices = @transform_5, window_bounds = array<i64: 16, 128>}]} {
    %0 = tpu.iota {dimensions = array<i32: 1>} : vector<16x128xi32>
    %c0 = arith.constant 0 : index
    %c0_0 = arith.constant 0 : index
    %1 = vector.load %arg1[%c0, %c0_0] : memref<16x1xi32, #tpu.memory_space<vmem>>, vector<16x1xi32>
    %2 = vector.broadcast %1 : vector<16x1xi32> to vector<16x128xi32>
    %3 = arith.cmpi eq, %2, %0 : vector<16x128xi32>
    %4 = arith.extui %3 : vector<16x128xi1> to vector<16x128xi32>
    %5 = arith.sitofp %4 : vector<16x128xi32> to vector<16x128xf32>
    %c0_1 = arith.constant 0 : index
    %c0_2 = arith.constant 0 : index
    %6 = vector.load %arg2[%c0_1, %c0_2] : memref<16x1xi32, #tpu.memory_space<vmem>>, vector<16x1xi32>
    %7 = vector.broadcast %6 : vector<16x1xi32> to vector<16x128xi32>
    %8 = arith.cmpi eq, %7, %0 : vector<16x128xi32>
    %9 = arith.extui %8 : vector<16x128xi1> to vector<16x128xi32>
    %10 = arith.sitofp %9 : vector<16x128xi32> to vector<16x128xf32>
    %11 = arith.addf %5, %10 : vector<16x128xf32>
    %c0_3 = arith.constant 0 : index
    %c0_4 = arith.constant 0 : index
    %12 = vector.load %arg3[%c0_3, %c0_4] : memref<128x128xf32, #tpu.memory_space<vmem>>, vector<128x128xf32>
    %cst = arith.constant dense<0.000000e+00> : vector<16x128xf32>
    %13 = tpu.matmul %11, %12, %cst {dimension_numbers = #tpu.dot_dimension_numbers<[1], [0], [0], [1], [0, 0, 1, 1], [], []>} : vector<16x128xf32>, vector<128x128xf32>, vector<16x128xf32> -> vector<16x128xf32>
    %c0_5 = arith.constant 0 : index
    %c0_6 = arith.constant 0 : index
    %14 = vector.load %arg4[%c0_5, %c0_6] : memref<128x128xf32, #tpu.memory_space<vmem>>, vector<128x128xf32>
    %cst_7 = arith.constant dense<0.000000e+00> : vector<16x128xf32>
    %15 = tpu.matmul %13, %14, %cst_7 {dimension_numbers = #tpu.dot_dimension_numbers<[1], [0], [0], [1], [0, 0, 1, 1], [], []>} : vector<16x128xf32>, vector<128x128xf32>, vector<16x128xf32> -> vector<16x128xf32>
    %cst_8 = arith.constant 5.000000e-01 : f32
    %16 = vector.broadcast %cst_8 : f32 to vector<16x128xf32>
    %17 = arith.mulf %16, %15 : vector<16x128xf32>
    %cst_9 = arith.constant 0.707106769 : f32
    %18 = vector.broadcast %cst_9 : f32 to vector<16x128xf32>
    %19 = arith.mulf %15, %18 : vector<16x128xf32>
    %20 = math.erf %19 : vector<16x128xf32>
    %cst_10 = arith.constant 1.000000e+00 : f32
    %21 = vector.broadcast %cst_10 : f32 to vector<16x128xf32>
    %22 = arith.addf %21, %20 : vector<16x128xf32>
    %23 = arith.mulf %17, %22 : vector<16x128xf32>
    %c0_11 = arith.constant 0 : index
    %c0_12 = arith.constant 0 : index
    %24 = vector.load %arg5[%c0_11, %c0_12] : memref<128x128xf32, #tpu.memory_space<vmem>>, vector<128x128xf32>
    %cst_13 = arith.constant dense<0.000000e+00> : vector<16x128xf32>
    %25 = tpu.matmul %23, %24, %cst_13 {dimension_numbers = #tpu.dot_dimension_numbers<[1], [0], [0], [1], [0, 0, 1, 1], [], []>} : vector<16x128xf32>, vector<128x128xf32>, vector<16x128xf32> -> vector<16x128xf32>
    %c0_14 = arith.constant 0 : index
    %c0_15 = arith.constant 0 : index
    %26 = vector.load %arg6[%c0_14, %c0_15] : memref<16x128xf32, #tpu.memory_space<vmem>>, vector<16x128xf32>
    tpu.vector_store %arg6[%c0_14, %c0_15], %25 {strides = array<i32>} : memref<16x128xf32, #tpu.memory_space<vmem>>, vector<16x128xf32>,
    return
  }
  func.func @transform_0(%arg0: i32) -> (i32, i32) {
    %c0_i32 = arith.constant 0 : i32
    %c0_i32_0 = arith.constant 0 : i32
    return %arg0, %c0_i32 : i32, i32
  }
  func.func @transform_1(%arg0: i32) -> (i32, i32) {
    %c0_i32 = arith.constant 0 : i32
    %c0_i32_0 = arith.constant 0 : i32
    return %arg0, %c0_i32 : i32, i32
  }
  func.func @transform_2(%arg0: i32) -> (i32, i32) {
    %c0_i32 = arith.constant 0 : i32
    %c0_i32_0 = arith.constant 0 : i32
    %c0_i32_1 = arith.constant 0 : i32
    return %c0_i32, %c0_i32_0 : i32, i32
  }
  func.func @transform_3(%arg0: i32) -> (i32, i32) {
    %c0_i32 = arith.constant 0 : i32
    %c0_i32_0 = arith.constant 0 : i32
    %c0_i32_1 = arith.constant 0 : i32
    return %c0_i32, %c0_i32_0 : i32, i32
  }
  func.func @transform_4(%arg0: i32) -> (i32, i32) {
    %c0_i32 = arith.constant 0 : i32
    %c0_i32_0 = arith.constant 0 : i32
    %c0_i32_1 = arith.constant 0 : i32
    return %c0_i32, %c0_i32_0 : i32, i32
  }
  func.func @transform_5(%arg0: i32) -> (i32, i32) {
    %c0_i32 = arith.constant 0 : i32
    %c0_i32_0 = arith.constant 0 : i32
    return %arg0, %c0_i32 : i32, i32
  }
}

</mosaic_0001>

<bundles_post_ra>
// kernel: tpu_custom_call.1
= control target key start
LH: loop header
LB: loop body
LE: loop exit
PB: predicated region body
PF: predicated region fallthrough
CT: control target
= control target key end

     0   :  { %10 = vsyncpa [#allocation3], 0  ;;  %s881_s0 = inlined_call_operand.vmem [shape: s32[16,1], index: 0, kind: input, shape index: {}]   ;;  %s882_s1 = inlined_call_operand.vmem [shape: s32[16,1], index: 1, kind: input, shape index: {}]   ;;  %s883_s2 = inlined_call_operand.hbm [shape: f32[128,128], index: 2, kind: input, shape index: {}]   ;;  %s884_s3 = inlined_call_operand.hbm [shape: f32[128,128], index: 3, kind: input, shape index: {}]   ;;  %s885_s4 = inlined_call_operand.hbm [shape: f32[128,128], index: 4, kind: input, shape index: {}]   ;;  %s886_s5 = inlined_call_operand.hbm [shape: f32[16,128], index: 5, kind: output, shape index: {}]  }
   0x1   :  { %11 = vsyncpa [#allocation6], 0 }
   0x2   :  { %12 = vsyncpa [#allocation4], 0  ;;  %s764_s18 = smov [#allocation5]   ;;  %s765_s20 = smov [#allocation2]  }
   0x3   :  { %s34_s19 = sshll.u32 %s764_s18, 4  ;;  %s22_s21 = sshll.u32 %s765_s20, 4  ;;  %s35_s19 = int_to_ptr.vmem [resolvable:$true] %s34_s19  ;;  %s802_s21 = int_to_ptr.vmem [resolvable:$true] %s22_s21 }
   0x4   :  { %s670_s24 = scalar_lea.hbm %s884_s3, 2048 }
   0x5   :  { %p671_p0 = scmp.ne.s32.totalorder %s884_s3, %s670_s24  ;;  %p674_p1 = scmp.lt.u32.totalorder %s670_s24, %s884_s3 }
   0x7   :  { %p676_p2 = pnand %p674_p1, %p671_p0 }
   0x9   :  { %679 = shalt.err (!%p676_p2)
}
   0xa   :  { %s680_s29 = scalar_lea.vmem %s35_s19, 2048  ;;  %p685_p4 = scmp.lt.s32.totalorder %s35_s19, %s35_s19 }
   0xb   :  { %p681_p3 = scmp.ne.s32.totalorder %s35_s19, %s680_s29  ;;  %p686_p5 = scmp.lt.s32.totalorder %s680_s29, %s680_s29 }
   0xd   :  { %p687_p6 = por %p686_p5, %p685_p4 }
   0xf   :  { %p688_p7 = pnand %p687_p6, %p681_p3 }
  0x11   :  { %691 = shalt.err (!%p688_p7)
}
  0x12   :  { %s766_s30 = smov 128   ;;  %s767_s6 = smov 8  }
  0x13   :  { %40 = dma.hbm_to_vmem [thread:$0]  %s884_s3, 2048, %s35_s19, [#allocation6], %s766_s30, %s766_s30, %s767_s6  }
  0x14   :  { %s692_s11 = scalar_lea.hbm %s883_s2, 2048 }
  0x15   :  { %p693_p8 = scmp.ne.s32.totalorder %s883_s2, %s692_s11  ;;  %p696_p9 = scmp.lt.u32.totalorder %s692_s11, %s883_s2 }
  0x17   :  { %p698_p10 = pnand %p696_p9, %p693_p8 }
  0x19   :  { %701 = shalt.err (!%p698_p10)
}
  0x1a   :  { %s702_s16 = scalar_lea.vmem %s802_s21, 2048  ;;  %p707_p12 = scmp.lt.s32.totalorder %s802_s21, %s802_s21 }
  0x1b   :  { %p703_p11 = scmp.ne.s32.totalorder %s802_s21, %s702_s16  ;;  %p708_p13 = scmp.lt.s32.totalorder %s702_s16, %s702_s16 }
  0x1d   :  { %p709_p0 = por %p708_p13, %p707_p12 }
  0x1f   :  { %p710_p1 = pnand %p709_p0, %p703_p11 }
  0x21   :  { %713 = shalt.err (!%p710_p1)
}
  0x22   :  { %28 = dma.hbm_to_vmem [thread:$0]  %s883_s2, 2048, %s802_s21, [#allocation3], %s766_s30, %s766_s30, %s767_s6  }
  0x23   :  { %s768_s18 = smov [#allocation7]   ;;  %s714_s23 = scalar_lea.hbm %s885_s4, 2048 }
  0x24   :  { %s46_s19 = sshll.u32 %s768_s18, 4  ;;  %p715_p2 = scmp.ne.s32.totalorder %s885_s4, %s714_s23  ;;  %s47_s19 = int_to_ptr.vmem [resolvable:$true] %s46_s19 }
  0x25   :  { %p718_p3 = scmp.lt.u32.totalorder %s714_s23, %s885_s4 }
  0x27   :  { %p720_p4 = pnand %p718_p3, %p715_p2 }
  0x29   :  { %723 = shalt.err (!%p720_p4)
}
  0x2a   :  { %s724_s28 = scalar_lea.vmem %s47_s19, 2048  ;;  %p729_p6 = scmp.lt.s32.totalorder %s47_s19, %s47_s19 }
  0x2b   :  { %p725_p5 = scmp.ne.s32.totalorder %s47_s19, %s724_s28  ;;  %p730_p7 = scmp.lt.s32.totalorder %s724_s28, %s724_s28 }
  0x2d   :  { %p731_p8 = por %p730_p7, %p729_p6 }
  0x2f   :  { %p732_p9 = pnand %p731_p8, %p725_p5 }
  0x31   :  { %735 = shalt.err (!%p732_p9)
}
  0x32   :  { %52 = dma.hbm_to_vmem [thread:$0]  %s885_s4, 2048, %s47_s19, [#allocation6], %s766_s30, %s766_s30, %s767_s6  }
  0x33   :  { %758 = dma.done.wait [#allocation3], 2048  }
  0x34   :  { %759 = vsyncadd [#allocation3], 4294965248 }
  0x35   :  { %760 = dma.done.wait [#allocation6], 4096  }
  0x36   :  { %761 = vsyncadd [#allocation6], 4294963200  ;;  %v769_v0 = vmov 0   ;;  %v65_v1 = vld [vmem:[%s881_s0 + $0x8] sm:$0xff]  ;;  %v64_v2 = vld [vmem:[%s881_s0] sm:$0xff]  ;;  %v62_v53 = vlaneseq  ;;  %v770_v59 = vmov 0.0  }
  0x37   :  { %665 = vset.pattern.permute.xlu1 %v769_v0  ;;  %664 = vset.pattern.permute.xlu0 %v769_v0  ;;  %v79_v3 = vld [vmem:[%s882_s1 + $0x8] sm:$0xff]  ;;  %v94_v4 = vld [vmem:[#allocation2] sm:$0xff]  ;;  %v95_v5 = vld [vmem:[#allocation2 + $0x8] sm:$0xff]  ;;  %s771_s0 = smov [#allocation8]  }
  0x38   :  { %70 = vperm.xlu1 %665, %v65_v1   ;;  %67 = vperm.xlu0 %664, %v64_v2   ;;  %v78_v6 = vld [vmem:[%s882_s1] sm:$0xff]  ;;  %v560_v7 = vpack.c.bf16 %v95_v5, %v94_v4  ;;  %v97_v9 = vld [vmem:[#allocation2 + $0x18] sm:$0xff]  ;;  %v98_v11 = vld [vmem:[#allocation2 + $0x20] sm:$0xff]  ;;  %v63_v54 = vand.u32 127, %v62_v53  ;;  %s384_s1 = sshll.u32 %s771_s0, 4  ;;  %s385_s1 = int_to_ptr.vmem [resolvable:$true] %s384_s1 }
  0x39   :  { %v96_v8 = vld [vmem:[#allocation2 + $0x10] sm:$0xff]  ;;  %v99_v12 = vld [vmem:[#allocation2 + $0x28] sm:$0xff]  ;;  %v101_v15 = vld [vmem:[#allocation2 + $0x38] sm:$0xff]  ;;  %s736_s13 = scalar_lea.vmem %s385_s1, 256  ;;  %p741_p11 = scmp.lt.s32.totalorder %s385_s1, %s385_s1 }
  0x3a   :  { %v564_v10 = vpack.c.bf16 %v97_v9, %v96_v8  ;;  %561 = vmatprep.subr.bf16.mxu0 %v560_v7  ;;  %v568_v13 = vpack.c.bf16 %v99_v12, %v98_v11  ;;  %v100_v14 = vld [vmem:[#allocation2 + $0x30] sm:$0xff]  ;;  %v185_v16 = vld [vmem:[#allocation5] sm:$0xff]  ;;  %v186_v17 = vld [vmem:[#allocation5 + $0x8] sm:$0xff]  ;;  %p737_p10 = scmp.ne.s32.totalorder %s385_s1, %s736_s13  ;;  %p742_p12 = scmp.lt.s32.totalorder %s736_s13, %s736_s13 }
  0x3b   :  { %563 = vmatpush3.bf16.msra.mxu0 %v560_v7  ;;  %v187_v18 = vld [vmem:[#allocation5 + $0x10] sm:$0xff]  ;;  %v572_v19 = vpack.c.bf16 %v101_v15, %v100_v14  ;;  %v102_v20 = vld [vmem:[#allocation2 + $0x40] sm:$0xff]  ;;  %v592_v21 = vpack.c.bf16 %v186_v17, %v185_v16  ;;  %v188_v22 = vld [vmem:[#allocation5 + $0x18] sm:$0xff] }
  0x3c   :  { %84 = vperm.xlu1 %665, %v79_v3   ;;  %81 = vperm.xlu0 %664, %v78_v6   ;;  %v103_v23 = vld [vmem:[#allocation2 + $0x48] sm:$0xff]  ;;  %v596_v24 = vpack.c.bf16 %v188_v22, %v187_v18  ;;  %v189_v25 = vld [vmem:[#allocation5 + $0x20] sm:$0xff]  ;;  %v104_v28 = vld [vmem:[#allocation2 + $0x50] sm:$0xff]  ;;  %p743_p13 = por %p742_p12, %p741_p11 }
  0x3d   :  { %565 = vmatprep.subr.bf16.mxu0 %v564_v10  ;;  %v190_v26 = vld [vmem:[#allocation5 + $0x28] sm:$0xff]  ;;  %593 = vmatprep.subr.bf16.mxu1 %v592_v21  ;;  %v576_v27 = vpack.c.bf16 %v103_v23, %v102_v20  ;;  %v105_v30 = vld [vmem:[#allocation2 + $0x58] sm:$0xff]  ;;  %v191_v31 = vld [vmem:[#allocation5 + $0x30] sm:$0xff] }
  0x3e   :  { %595 = vmatpush3.bf16.msra.mxu1 %v592_v21  ;;  %v600_v29 = vpack.c.bf16 %v190_v26, %v189_v25  ;;  %v192_v32 = vld [vmem:[#allocation5 + $0x38] sm:$0xff]  ;;  %v580_v33 = vpack.c.bf16 %v105_v30, %v104_v28  ;;  %v106_v34 = vld [vmem:[#allocation2 + $0x60] sm:$0xff]  ;;  %v107_v36 = vld [vmem:[#allocation2 + $0x68] sm:$0xff]  ;;  %p744_p0 = pnand %p743_p13, %p737_p10 }
  0x3f   :  { %567 = vmatpush3.bf16.msra.mxu0 %v564_v10  ;;  %597 = vmatprep.subr.bf16.mxu1 %v596_v24  ;;  %v604_v35 = vpack.c.bf16 %v192_v32, %v191_v31  ;;  %v193_v37 = vld [vmem:[#allocation5 + $0x40] sm:$0xff]  ;;  %v194_v38 = vld [vmem:[#allocation5 + $0x48] sm:$0xff]  ;;  %v584_v39 = vpack.c.bf16 %v107_v36, %v106_v34  ;;  %v108_v40 = vld [vmem:[#allocation2 + $0x70] sm:$0xff] }
  0x40   :  { %569 = vmatprep.subr.bf16.mxu0 %v568_v13  ;;  %v608_v41 = vpack.c.bf16 %v194_v38, %v193_v37  ;;  %v109_v42 = vld [vmem:[#allocation2 + $0x78] sm:$0xff]  ;;  %v195_v43 = vld [vmem:[#allocation5 + $0x50] sm:$0xff]  ;;  %v197_v47 = vld [vmem:[#allocation5 + $0x60] sm:$0xff] }
  0x41   :  { %v196_v44 = vld [vmem:[#allocation5 + $0x58] sm:$0xff]  ;;  %v588_v45 = vpack.c.bf16 %v109_v42, %v108_v40  ;;  %v198_v48 = vld [vmem:[#allocation5 + $0x68] sm:$0xff]  ;;  %v199_v50 = vld [vmem:[#allocation5 + $0x70] sm:$0xff] }
  0x42   :  { %599 = vmatpush3.bf16.msra.mxu1 %v596_v24  ;;  %v612_v46 = vpack.c.bf16 %v196_v44, %v195_v43  ;;  %v616_v49 = vpack.c.bf16 %v198_v48, %v197_v47  ;;  %v200_v51 = vld [vmem:[#allocation5 + $0x78] sm:$0xff]  ;;  %v286_v2 = vld [vmem:[#allocation7] sm:$0xff]  ;;  %v287_v3 = vld [vmem:[#allocation7 + $0x8] sm:$0xff] }
  0x43   :  { %571 = vmatpush3.bf16.msra.mxu0 %v568_v13  ;;  %601 = vmatprep.subr.bf16.mxu1 %v600_v29  ;;  %v620_v52 = vpack.c.bf16 %v200_v51, %v199_v50  ;;  %v288_v4 = vld [vmem:[#allocation7 + $0x10] sm:$0xff]  ;;  %v624_v5 = vpack.c.bf16 %v287_v3, %v286_v2  ;;  %v289_v6 = vld [vmem:[#allocation7 + $0x18] sm:$0xff]  ;;  %v290_v8 = vld [vmem:[#allocation7 + $0x20] sm:$0xff] }
  0x44   :  { %573 = vmatprep.subr.bf16.mxu0 %v572_v19  ;;  %v628_v7 = vpack.c.bf16 %v289_v6, %v288_v4  ;;  %v291_v9 = vld [vmem:[#allocation7 + $0x28] sm:$0xff]  ;;  %v292_v13 = vld [vmem:[#allocation7 + $0x30] sm:$0xff]  ;;  %v293_v14 = vld [vmem:[#allocation7 + $0x38] sm:$0xff] }
  0x45   :  { %v632_v10 = vpack.c.bf16 %v291_v9, %v290_v8  ;;  %v636_v15 = vpack.c.bf16 %v293_v14, %v292_v13  ;;  %v294_v16 = vld [vmem:[#allocation7 + $0x40] sm:$0xff]  ;;  %v295_v17 = vld [vmem:[#allocation7 + $0x48] sm:$0xff]  ;;  %v297_v20 = vld [vmem:[#allocation7 + $0x58] sm:$0xff] }
  0x46   :  { %603 = vmatpush3.bf16.msra.mxu1 %v600_v29  ;;  %v640_v18 = vpack.c.bf16 %v295_v17, %v294_v16  ;;  %v298_v22 = vld [vmem:[#allocation7 + $0x60] sm:$0xff]  ;;  %v299_v23 = vld [vmem:[#allocation7 + $0x68] sm:$0xff]  ;;  %v300_v25 = vld [vmem:[#allocation7 + $0x70] sm:$0xff] }
  0x47   :  { %575 = vmatpush3.bf16.msra.mxu0 %v572_v19  ;;  %605 = vmatprep.subr.bf16.mxu1 %v604_v35  ;;  %v296_v19 = vld [vmem:[#allocation7 + $0x50] sm:$0xff]  ;;  %v648_v24 = vpack.c.bf16 %v299_v23, %v298_v22  ;;  %v301_v26 = vld [vmem:[#allocation7 + $0x78] sm:$0xff] }
  0x48   :  { %577 = vmatprep.subr.bf16.mxu0 %v576_v27  ;;  %v644_v21 = vpack.c.bf16 %v297_v20, %v296_v19 }
  0x4a   :  { %607 = vmatpush3.bf16.msra.mxu1 %v604_v35 }
  0x4b   :  { %579 = vmatpush3.bf16.msra.mxu0 %v576_v27  ;;  %609 = vmatprep.subr.bf16.mxu1 %v608_v41  ;;  %v652_v27 = vpack.c.bf16 %v301_v26, %v300_v25 }
  0x4c   :  { %581 = vmatprep.subr.bf16.mxu0 %v580_v33 }
  0x4e   :  { %611 = vmatpush3.bf16.msra.mxu1 %v608_v41 }
  0x4f   :  { %583 = vmatpush3.bf16.msra.mxu0 %v580_v33  ;;  %613 = vmatprep.subr.bf16.mxu1 %v612_v46 }
  0x50   :  { %585 = vmatprep.subr.bf16.mxu0 %v584_v39 }
  0x52   :  { %615 = vmatpush3.bf16.msra.mxu1 %v612_v46 }
  0x53   :  { %587 = vmatpush3.bf16.msra.mxu0 %v584_v39  ;;  %617 = vmatprep.subr.bf16.mxu1 %v616_v49 }
  0x54   :  { %589 = vmatprep.subr.bf16.mxu0 %v588_v45 }
  0x56   :  { %619 = vmatpush3.bf16.msra.mxu1 %v616_v49 }
  0x57   :  { %591 = vmatpush3.bf16.msra.mxu0 %v588_v45  ;;  %621 = vmatprep.subr.bf16.mxu1 %v620_v52 }
  0x58   :  { %625 = vmatprep.subr.bf16.mxu0 %v624_v5 }
  0x5a   :  { %623 = vmatpush3.bf16.msra.mxu1 %v620_v52 }
  0xb7   :  { %v71_v55 = vpop.permute.xlu1 %70  ;;  %v68_v56 = vpop.permute.xlu0 %67 }
  0xb8   :  { %vm73_vm0 = vcmp.eq.s32.totalorder %v71_v55, %v63_v54  ;;  %vm72_vm1 = vcmp.eq.s32.totalorder %v68_v56, %v63_v54 }
  0xb9   :  { %v398_v60 = vsel %vm73_vm0, 1.0, %v770_v59  ;;  %v397_v62 = vsel %vm72_vm1, 1.0, %v770_v59 }
  0xbb   :  { %v85_v57 = vpop.permute.xlu1 %84  ;;  %v82_v58 = vpop.permute.xlu0 %81 }
  0xbc   :  { %vm87_vm2 = vcmp.eq.s32.totalorder %v85_v57, %v63_v54  ;;  %vm86_vm3 = vcmp.eq.s32.totalorder %v82_v58, %v63_v54 }
  0xbd   :  { %v400_v61 = vsel %vm87_vm2, 1.0, %v770_v59  ;;  %v399_v63 = vsel %vm86_vm3, 1.0, %v770_v59 }
  0xbe   :  { %v93_v0 = vadd.f32 %v400_v61, %v398_v60  ;;  %v92_v1 = vadd.f32 %v399_v63, %v397_v62 }
  0xc0   :  { %487 = vmatprep.mubr.f32.mxu0 %v92_v1 }
  0xc1   :  { %488 = vmatmul.mubr.f32.vlgmr.msra.gmra.mrb[0].mxu0 %v93_v0 }
  0xc2   :  { %627 = vmatpush3.bf16.msra.mxu0 %v624_v5 }
  0xc3   :  { %629 = vmatprep.subr.bf16.mxu0 %v628_v7 }
  0xc6   :  { %631 = vmatpush3.bf16.msra.mxu0 %v628_v7 }
  0xc7   :  { %633 = vmatprep.subr.bf16.mxu0 %v632_v10 }
  0xca   :  { %635 = vmatpush3.bf16.msra.mxu0 %v632_v10 }
  0xcb   :  { %637 = vmatprep.subr.bf16.mxu0 %v636_v15 }
  0xce   :  { %639 = vmatpush3.bf16.msra.mxu0 %v636_v15 }
  0xcf   :  { %641 = vmatprep.subr.bf16.mxu0 %v640_v18 }
  0xd2   :  { %643 = vmatpush3.bf16.msra.mxu0 %v640_v18 }
  0xd3   :  { %645 = vmatprep.subr.bf16.mxu0 %v644_v21 }
  0xd6   :  { %647 = vmatpush3.bf16.msra.mxu0 %v644_v21 }
  0xd7   :  { %649 = vmatprep.subr.bf16.mxu0 %v648_v24 }
  0xda   :  { %651 = vmatpush3.bf16.msra.mxu0 %v648_v24 }
  0xdb   :  { %653 = vmatprep.subr.bf16.mxu0 %v652_v27 }
  0xde   :  { %655 = vmatpush3.bf16.msra.mxu0 %v652_v27 }
 0x194   :  { %v489_v11 = vpop.f32.mrb[0].mxu0 }
 0x195   :  { %v176_v12 = vpop.f32.mrb[1].mxu0 }
 0x196   :  { %522 = vmatprep.mubr.f32.mxu1 %v176_v12 }
 0x197   :  { %523 = vmatmul.mubr.f32.vlgmr.msra.gmra.mrb[0].mxu1 %v489_v11 }
 0x26a   :  { %v524_v28 = vpop.f32.mrb[0].mxu1 }
 0x26b   :  { %v279_v29 = vmul.f32 0.70710677, %v524_v28  ;;  %v267_v30 = vpop.f32.mrb[1].mxu1  ;;  %v277_v37 = vmul.f32 0.5, %v524_v28 }
 0x26c   :  { %v278_v31 = vmul.f32 0.70710677, %v267_v30  ;;  %v276_v35 = vmul.f32 0.5, %v267_v30 }
 0x26d   :  { %666 = verf.f32 %v279_v29 }
 0x26e   :  { %668 = verf.f32 %v278_v31 }
 0x277   :  { %v667_v32 = vpop.eup %666 }
 0x278   :  { %v669_v33 = vpop.eup %668  ;;  %v283_v34 = vadd.f32 1.0, %v667_v32 }
 0x279   :  { %v282_v36 = vadd.f32 1.0, %v669_v33 }
 0x27a   :  { %v285_v39 = vmul.f32 %v283_v34, %v277_v37 }
 0x27b   :  { %v284_v38 = vmul.f32 %v282_v36, %v276_v35 }
 0x27d   :  { %557 = vmatprep.mubr.f32.mxu0 %v284_v38 }
 0x27e   :  { %558 = vmatmul.mubr.f32.vlgmr.msra.gmra.mrb[2].mxu0 %v285_v39 }
 0x351   :  { %v559_v40 = vpop.f32.mrb[2].mxu0 }
 0x352   :  { %378 = vst [vmem:[#allocation8 + $0x8] sm:$0xff] %v559_v40  ;;  %v368_v41 = vpop.f32.mrb[3].mxu0 }
 0x353   :  { %377 = vst [vmem:[#allocation8] sm:$0xff] %v368_v41 }
 0x354   :  { %747 = shalt.err (!%p744_p0)
}
 0x355   :  { %s748_s16 = scalar_lea.hbm %s886_s5, 256 }
 0x356   :  { %p749_p1 = scmp.ne.s32.totalorder %s886_s5, %s748_s16  ;;  %p752_p2 = scmp.lt.u32.totalorder %s748_s16, %s886_s5 }
 0x358   :  { %p754_p3 = pnand %p752_p2, %p749_p1 }
 0x35a   :  { %757 = shalt.err (!%p754_p3)
}
 0x35b   :  { %390 = dma.vmem_to_hbm [thread:$0]  %s385_s1, 256, %s886_s5, [#allocation4], %s766_s30, %s766_s30, %s767_s6  }
 0x35c   :  { %762 = dma.done.wait [#allocation4], 256  }
 0x35d   :  { %763 = vsyncadd [#allocation4], 4294967040 }
 0x35e   :  { %394 = vsyncpa [#allocation3], 1 }
 0x35f   :  { %395 = vsyncpa [#allocation6], 1 }
 0x360   :  { %396 = vsyncpa [#allocation4], 1 }

// kernel: tpu_custom_call.1
= control target key start
LH: loop header
LB: loop body
LE: loop exit
PB: predicated region body
PF: predicated region fallthrough
CT: control target
= control target key end

     0   :  { %10 = vsyncpa [#allocation3], 0  ;;  %s881_s0 = inlined_call_operand.vmem [shape: s32[16,1], index: 0, kind: input, shape index: {}]   ;;  %s882_s1 = inlined_call_operand.vmem [shape: s32[16,1], index: 1, kind: input, shape index: {}]   ;;  %s883_s2 = inlined_call_operand.hbm [shape: f32[128,128], index: 2, kind: input, shape index: {}]   ;;  %s884_s3 = inlined_call_operand.hbm [shape: f32[128,128], index: 3, kind: input, shape index: {}]   ;;  %s885_s4 = inlined_call_operand.hbm [shape: f32[128,128], index: 4, kind: input, shape index: {}]   ;;  %s886_s5 = inlined_call_operand.hbm [shape: f32[16,128], index: 5, kind: output, shape index: {}]  }
   0x1   :  { %11 = vsyncpa [#allocation6], 0 }
   0x2   :  { %12 = vsyncpa [#allocation4], 0  ;;  %s764_s18 = smov [#allocation5]   ;;  %s765_s20 = smov [#allocation2]  }
   0x3   :  { %s34_s19 = sshll.u32 %s764_s18, 4  ;;  %s22_s21 = sshll.u32 %s765_s20, 4  ;;  %s35_s19 = int_to_ptr.vmem [resolvable:$true] %s34_s19  ;;  %s802_s21 = int_to_ptr.vmem [resolvable:$true] %s22_s21 }
   0x4   :  { %s670_s24 = scalar_lea.hbm %s884_s3, 2048 }
   0x5   :  { %p671_p0 = scmp.ne.s32.totalorder %s884_s3, %s670_s24  ;;  %p674_p1 = scmp.lt.u32.totalorder %s670_s24, %s884_s3 }
   0x7   :  { %p676_p2 = pnand %p674_p1, %p671_p0 }
   0x9   :  { %679 = shalt.err (!%p676_p2)
}
   0xa   :  { %s680_s29 = scalar_lea.vmem %s35_s19, 2048  ;;  %p685_p4 = scmp.lt.s32.totalorder %s35_s19, %s35_s19 }
   0xb   :  { %p681_p3 = scmp.ne.s32.totalorder %s35_s19, %s680_s29  ;;  %p686_p5 = scmp.lt.s32.totalorder %s680_s29, %s680_s29 }
   0xd   :  { %p687_p6 = por %p686_p5, %p685_p4 }
   0xf   :  { %p688_p7 = pnand %p687_p6, %p681_p3 }
  0x11   :  { %691 = shalt.err (!%p688_p7)
}
  0x12   :  { %s766_s30 = smov 128   ;;  %s767_s6 = smov 8  }
  0x13   :  { %40 = dma.hbm_to_vmem [thread:$0]  %s884_s3, 2048, %s35_s19, [#allocation6], %s766_s30, %s766_s30, %s767_s6  }
  0x14   :  { %s692_s11 = scalar_lea.hbm %s883_s2, 2048 }
  0x15   :  { %p693_p8 = scmp.ne.s32.totalorder %s883_s2, %s692_s11  ;;  %p696_p9 = scmp.lt.u32.totalorder %s692_s11, %s883_s2 }
  0x17   :  { %p698_p10 = pnand %p696_p9, %p693_p8 }
  0x19   :  { %701 = shalt.err (!%p698_p10)
}
  0x1a   :  { %s702_s16 = scalar_lea.vmem %s802_s21, 2048  ;;  %p707_p12 = scmp.lt.s32.totalorder %s802_s21, %s802_s21 }
  0x1b   :  { %p703_p11 = scmp.ne.s32.totalorder %s802_s21, %s702_s16  ;;  %p708_p13 = scmp.lt.s32.totalorder %s702_s16, %s702_s16 }
  0x1d   :  { %p709_p0 = por %p708_p13, %p707_p12 }
  0x1f   :  { %p710_p1 = pnand %p709_p0, %p703_p11 }
  0x21   :  { %713 = shalt.err (!%p710_p1)
}
  0x22   :  { %28 = dma.hbm_to_vmem [thread:$0]  %s883_s2, 2048, %s802_s21, [#allocation3], %s766_s30, %s766_s30, %s767_s6  }
  0x23   :  { %s768_s18 = smov [#allocation7]   ;;  %s714_s23 = scalar_lea.hbm %s885_s4, 2048 }
  0x24   :  { %s46_s19 = sshll.u32 %s768_s18, 4  ;;  %p715_p2 = scmp.ne.s32.totalorder %s885_s4, %s714_s23  ;;  %s47_s19 = int_to_ptr.vmem [resolvable:$true] %s46_s19 }
  0x25   :  { %p718_p3 = scmp.lt.u32.totalorder %s714_s23, %s885_s4 }
  0x27   :  { %p720_p4 = pnand %p718_p3, %p715_p2 }
  0x29   :  { %723 = shalt.err (!%p720_p4)
}
  0x2a   :  { %s724_s28 = scalar_lea.vmem %s47_s19, 2048  ;;  %p729_p6 = scmp.lt.s32.totalorder %s47_s19, %s47_s19 }
  0x2b   :  { %p725_p5 = scmp.ne.s32.totalorder %s47_s19, %s724_s28  ;;  %p730_p7 = scmp.lt.s32.totalorder %s724_s28, %s724_s28 }
  0x2d   :  { %p731_p8 = por %p730_p7, %p729_p6 }
  0x2f   :  { %p732_p9 = pnand %p731_p8, %p725_p5 }
  0x31   :  { %735 = shalt.err (!%p732_p9)
}
  0x32   :  { %52 = dma.hbm_to_vmem [thread:$0]  %s885_s4, 2048, %s47_s19, [#allocation6], %s766_s30, %s766_s30, %s767_s6  }
  0x33   :  { %758 = dma.done.wait [#allocation3], 2048  }
  0x34   :  { %759 = vsyncadd [#allocation3], 4294965248 }
  0x35   :  { %760 = dma.done.wait [#allocation6], 4096  }
  0x36   :  { %761 = vsyncadd [#allocation6], 4294963200  ;;  %v769_v0 = vmov 0   ;;  %v65_v1 = vld [vmem:[%s881_s0 + $0x8] sm:$0xff]  ;;  %v64_v2 = vld [vmem:[%s881_s0] sm:$0xff]  ;;  %v62_v53 = vlaneseq  ;;  %v770_v59 = vmov 0.0  }
  0x37   :  { %665 = vset.pattern.permute.xlu1 %v769_v0  ;;  %664 = vset.pattern.permute.xlu0 %v769_v0  ;;  %v79_v3 = vld [vmem:[%s882_s1 + $0x8] sm:$0xff]  ;;  %v94_v4 = vld [vmem:[#allocation2] sm:$0xff]  ;;  %v95_v5 = vld [vmem:[#allocation2 + $0x8] sm:$0xff]  ;;  %s771_s0 = smov [#allocation8]  }
  0x38   :  { %70 = vperm.xlu1 %665, %v65_v1   ;;  %67 = vperm.xlu0 %664, %v64_v2   ;;  %v78_v6 = vld [vmem:[%s882_s1] sm:$0xff]  ;;  %v560_v7 = vpack.c.bf16 %v95_v5, %v94_v4  ;;  %v97_v9 = vld [vmem:[#allocation2 + $0x18] sm:$0xff]  ;;  %v98_v11 = vld [vmem:[#allocation2 + $0x20] sm:$0xff]  ;;  %v63_v54 = vand.u32 127, %v62_v53  ;;  %s384_s1 = sshll.u32 %s771_s0, 4  ;;  %s385_s1 = int_to_ptr.vmem [resolvable:$true] %s384_s1 }
  0x39   :  { %v96_v8 = vld [vmem:[#allocation2 + $0x10] sm:$0xff]  ;;  %v99_v12 = vld [vmem:[#allocation2 + $0x28] sm:$0xff]  ;;  %v101_v15 = vld [vmem:[#allocation2 + $0x38] sm:$0xff]  ;;  %s736_s13 = scalar_lea.vmem %s385_s1, 256  ;;  %p741_p11 = scmp.lt.s32.totalorder %s385_s1, %s385_s1 }
  0x3a   :  { %v564_v10 = vpack.c.bf16 %v97_v9, %v96_v8  ;;  %561 = vmatprep.subr.bf16.mxu0 %v560_v7  ;;  %v568_v13 = vpack.c.bf16 %v99_v12, %v98_v11  ;;  %v100_v14 = vld [vmem:[#allocation2 + $0x30] sm:$0xff]  ;;  %v185_v16 = vld [vmem:[#allocation5] sm:$0xff]  ;;  %v186_v17 = vld [vmem:[#allocation5 + $0x8] sm:$0xff]  ;;  %p737_p10 = scmp.ne.s32.totalorder %s385_s1, %s736_s13  ;;  %p742_p12 = scmp.lt.s32.totalorder %s736_s13, %s736_s13 }
  0x3b   :  { %563 = vmatpush3.bf16.msra.mxu0 %v560_v7  ;;  %v187_v18 = vld [vmem:[#allocation5 + $0x10] sm:$0xff]  ;;  %v572_v19 = vpack.c.bf16 %v101_v15, %v100_v14  ;;  %v102_v20 = vld [vmem:[#allocation2 + $0x40] sm:$0xff]  ;;  %v592_v21 = vpack.c.bf16 %v186_v17, %v185_v16  ;;  %v188_v22 = vld [vmem:[#allocation5 + $0x18] sm:$0xff] }
  0x3c   :  { %84 = vperm.xlu1 %665, %v79_v3   ;;  %81 = vperm.xlu0 %664, %v78_v6   ;;  %v103_v23 = vld [vmem:[#allocation2 + $0x48] sm:$0xff]  ;;  %v596_v24 = vpack.c.bf16 %v188_v22, %v187_v18  ;;  %v189_v25 = vld [vmem:[#allocation5 + $0x20] sm:$0xff]  ;;  %v104_v28 = vld [vmem:[#allocation2 + $0x50] sm:$0xff]  ;;  %p743_p13 = por %p742_p12, %p741_p11 }
  0x3d   :  { %565 = vmatprep.subr.bf16.mxu0 %v564_v10  ;;  %v190_v26 = vld [vmem:[#allocation5 + $0x28] sm:$0xff]  ;;  %593 = vmatprep.subr.bf16.mxu1 %v592_v21  ;;  %v576_v27 = vpack.c.bf16 %v103_v23, %v102_v20  ;;  %v105_v30 = vld [vmem:[#allocation2 + $0x58] sm:$0xff]  ;;  %v191_v31 = vld [vmem:[#allocation5 + $0x30] sm:$0xff] }
  0x3e   :  { %595 = vmatpush3.bf16.msra.mxu1 %v592_v21  ;;  %v600_v29 = vpack.c.bf16 %v190_v26, %v189_v25  ;;  %v192_v32 = vld [vmem:[#allocation5 + $0x38] sm:$0xff]  ;;  %v580_v33 = vpack.c.bf16 %v105_v30, %v104_v28  ;;  %v106_v34 = vld [vmem:[#allocation2 + $0x60] sm:$0xff]  ;;  %v107_v36 = vld [vmem:[#allocation2 + $0x68] sm:$0xff]  ;;  %p744_p0 = pnand %p743_p13, %p737_p10 }
  0x3f   :  { %567 = vmatpush3.bf16.msra.mxu0 %v564_v10  ;;  %597 = vmatprep.subr.bf16.mxu1 %v596_v24  ;;  %v604_v35 = vpack.c.bf16 %v192_v32, %v191_v31  ;;  %v193_v37 = vld [vmem:[#allocation5 + $0x40] sm:$0xff]  ;;  %v194_v38 = vld [vmem:[#allocation5 + $0x48] sm:$0xff]  ;;  %v584_v39 = vpack.c.bf16 %v107_v36, %v106_v34  ;;  %v108_v40 = vld [vmem:[#allocation2 + $0x70] sm:$0xff] }
  0x40   :  { %569 = vmatprep.subr.bf16.mxu0 %v568_v13  ;;  %v608_v41 = vpack.c.bf16 %v194_v38, %v193_v37  ;;  %v109_v42 = vld [vmem:[#allocation2 + $0x78] sm:$0xff]  ;;  %v195_v43 = vld [vmem:[#allocation5 + $0x50] sm:$0xff]  ;;  %v197_v47 = vld [vmem:[#allocation5 + $0x60] sm:$0xff] }
  0x41   :  { %v196_v44 = vld [vmem:[#allocation5 + $0x58] sm:$0xff]  ;;  %v588_v45 = vpack.c.bf16 %v109_v42, %v108_v40  ;;  %v198_v48 = vld [vmem:[#allocation5 + $0x68] sm:$0xff]  ;;  %v199_v50 = vld [vmem:[#allocation5 + $0x70] sm:$0xff] }
  0x42   :  { %599 = vmatpush3.bf16.msra.mxu1 %v596_v24  ;;  %v612_v46 = vpack.c.bf16 %v196_v44, %v195_v43  ;;  %v616_v49 = vpack.c.bf16 %v198_v48, %v197_v47  ;;  %v200_v51 = vld [vmem:[#allocation5 + $0x78] sm:$0xff]  ;;  %v286_v2 = vld [vmem:[#allocation7] sm:$0xff]  ;;  %v287_v3 = vld [vmem:[#allocation7 + $0x8] sm:$0xff] }
  0x43   :  { %571 = vmatpush3.bf16.msra.mxu0 %v568_v13  ;;  %601 = vmatprep.subr.bf16.mxu1 %v600_v29  ;;  %v620_v52 = vpack.c.bf16 %v200_v51, %v199_v50  ;;  %v288_v4 = vld [vmem:[#allocation7 + $0x10] sm:$0xff]  ;;  %v624_v5 = vpack.c.bf16 %v287_v3, %v286_v2  ;;  %v289_v6 = vld [vmem:[#allocation7 + $0x18] sm:$0xff]  ;;  %v290_v8 = vld [vmem:[#allocation7 + $0x20] sm:$0xff] }
  0x44   :  { %573 = vmatprep.subr.bf16.mxu0 %v572_v19  ;;  %v628_v7 = vpack.c.bf16 %v289_v6, %v288_v4  ;;  %v291_v9 = vld [vmem:[#allocation7 + $0x28] sm:$0xff]  ;;  %v292_v13 = vld [vmem:[#allocation7 + $0x30] sm:$0xff]  ;;  %v293_v14 = vld [vmem:[#allocation7 + $0x38] sm:$0xff] }
  0x45   :  { %v632_v10 = vpack.c.bf16 %v291_v9, %v290_v8  ;;  %v636_v15 = vpack.c.bf16 %v293_v14, %v292_v13  ;;  %v294_v16 = vld [vmem:[#allocation7 + $0x40] sm:$0xff]  ;;  %v295_v17 = vld [vmem:[#allocation7 + $0x48] sm:$0xff]  ;;  %v297_v20 = vld [vmem:[#allocation7 + $0x58] sm:$0xff] }
  0x46   :  { %603 = vmatpush3.bf16.msra.mxu1 %v600_v29  ;;  %v640_v18 = vpack.c.bf16 %v295_v17, %v294_v16  ;;  %v298_v22 = vld [vmem:[#allocation7 + $0x60] sm:$0xff]  ;;  %v299_v23 = vld [vmem:[#allocation7 + $0x68] sm:$0xff]  ;;  %v300_v25 = vld [vmem:[#allocation7 + $0x70] sm:$0xff] }
  0x47   :  { %575 = vmatpush3.bf16.msra.mxu0 %v572_v19  ;;  %605 = vmatprep.subr.bf16.mxu1 %v604_v35  ;;  %v296_v19 = vld [vmem:[#allocation7 + $0x50] sm:$0xff]  ;;  %v648_v24 = vpack.c.bf16 %v299_v23, %v298_v22  ;;  %v301_v26 = vld [vmem:[#allocation7 + $0x78] sm:$0xff] }
  0x48   :  { %577 = vmatprep.subr.bf16.mxu0 %v576_v27  ;;  %v644_v21 = vpack.c.bf16 %v297_v20, %v296_v19 }
  0x4a   :  { %607 = vmatpush3.bf16.msra.mxu1 %v604_v35 }
  0x4b   :  { %579 = vmatpush3.bf16.msra.mxu0 %v576_v27  ;;  %609 = vmatprep.subr.bf16.mxu1 %v608_v41  ;;  %v652_v27 = vpack.c.bf16 %v301_v26, %v300_v25 }
  0x4c   :  { %581 = vmatprep.subr.bf16.mxu0 %v580_v33 }
  0x4e   :  { %611 = vmatpush3.bf16.msra.mxu1 %v608_v41 }
  0x4f   :  { %583 = vmatpush3.bf16.msra.mxu0 %v580_v33  ;;  %613 = vmatprep.subr.bf16.mxu1 %v612_v46 }
  0x50   :  { %585 = vmatprep.subr.bf16.mxu0 %v584_v39 }
  0x52   :  { %615 = vmatpush3.bf16.msra.mxu1 %v612_v46 }
  0x53   :  { %587 = vmatpush3.bf16.msra.mxu0 %v584_v39  ;;  %617 = vmatprep.subr.bf16.mxu1 %v616_v49 }
  0x54   :  { %589 = vmatprep.subr.bf16.mxu0 %v588_v45 }
  0x56   :  { %619 = vmatpush3.bf16.msra.mxu1 %v616_v49 }
  0x57   :  { %591 = vmatpush3.bf16.msra.mxu0 %v588_v45  ;;  %621 = vmatprep.subr.bf16.mxu1 %v620_v52 }
  0x58   :  { %625 = vmatprep.subr.bf16.mxu0 %v624_v5 }
  0x5a   :  { %623 = vmatpush3.bf16.msra.mxu1 %v620_v52 }
  0xb7   :  { %v71_v55 = vpop.permute.xlu1 %70  ;;  %v68_v56 = vpop.permute.xlu0 %67 }
  0xb8   :  { %vm73_vm0 = vcmp.eq.s32.totalorder %v71_v55, %v63_v54  ;;  %vm72_vm1 = vcmp.eq.s32.totalorder %v68_v56, %v63_v54 }
  0xb9   :  { %v398_v60 = vsel %vm73_vm0, 1.0, %v770_v59  ;;  %v397_v62 = vsel %vm72_vm1, 1.0, %v770_v59 }
  0xbb   :  { %v85_v57 = vpop.permute.xlu1 %84  ;;  %v82_v58 = vpop.permute.xlu0 %81 }
  0xbc   :  { %vm87_vm2 = vcmp.eq.s32.totalorder %v85_v57, %v63_v54  ;;  %vm86_vm3 = vcmp.eq.s32.totalorder %v82_v58, %v63_v54 }
  0xbd   :  { %v400_v61 = vsel %vm87_vm2, 1.0, %v770_v59  ;;  %v399_v63 = vsel %vm86_vm3, 1.0, %v770_v59 }
  0xbe   :  { %v93_v0 = vadd.f32 %v400_v61, %v398_v60  ;;  %v92_v1 = vadd.f32 %v399_v63, %v397_v62 }
  0xc0   :  { %487 = vmatprep.mubr.f32.mxu0 %v92_v1 }
  0xc1   :  { %488 = vmatmul.mubr.f32.vlgmr.msra.gmra.mrb[0].mxu0 %v93_v0 }
  0xc2   :  { %627 = vmatpush3.bf16.msra.mxu0 %v624_v5 }
  0xc3   :  { %629 = vmatprep.subr.bf16.mxu0 %v628_v7 }
  0xc6   :  { %631 = vmatpush3.bf16.msra.mxu0 %v628_v7 }
  0xc7   :  { %633 = vmatprep.subr.bf16.mxu0 %v632_v10 }
  0xca   :  { %635 = vmatpush3.bf16.msra.mxu0 %v632_v10 }
  0xcb   :  { %637 = vmatprep.subr.bf16.mxu0 %v636_v15 }
  0xce   :  { %639 = vmatpush3.bf16.msra.mxu0 %v636_v15 }
  0xcf   :  { %641 = vmatprep.subr.bf16.mxu0 %v640_v18 }
  0xd2   :  { %643 = vmatpush3.bf16.msra.mxu0 %v640_v18 }
  0xd3   :  { %645 = vmatprep.subr.bf16.mxu0 %v644_v21 }
  0xd6   :  { %647 = vmatpush3.bf16.msra.mxu0 %v644_v21 }
  0xd7   :  { %649 = vmatprep.subr.bf16.mxu0 %v648_v24 }
  0xda   :  { %651 = vmatpush3.bf16.msra.mxu0 %v648_v24 }
  0xdb   :  { %653 = vmatprep.subr.bf16.mxu0 %v652_v27 }
  0xde   :  { %655 = vmatpush3.bf16.msra.mxu0 %v652_v27 }
 0x194   :  { %v489_v11 = vpop.f32.mrb[0].mxu0 }
 0x195   :  { %v176_v12 = vpop.f32.mrb[1].mxu0 }
 0x196   :  { %522 = vmatprep.mubr.f32.mxu1 %v176_v12 }
 0x197   :  { %523 = vmatmul.mubr.f32.vlgmr.msra.gmra.mrb[0].mxu1 %v489_v11 }
 0x26a   :  { %v524_v28 = vpop.f32.mrb[0].mxu1 }
 0x26b   :  { %v279_v29 = vmul.f32 0.70710677, %v524_v28  ;;  %v267_v30 = vpop.f32.mrb[1].mxu1  ;;  %v277_v37 = vmul.f32 0.5, %v524_v28 }
 0x26c   :  { %v278_v31 = vmul.f32 0.70710677, %v267_v30  ;;  %v276_v35 = vmul.f32 0.5, %v267_v30 }
 0x26d   :  { %666 = verf.f32 %v279_v29 }
 0x26e   :  { %668 = verf.f32 %v278_v31 }
 0x277   :  { %v667_v32 = vpop.eup %666 }
 0x278   :  { %v669_v33 = vpop.eup %668  ;;  %v283_v34 = vadd.f32 1.0, %v667_v32 }
 0x279   :  { %v282_v36 = vadd.f32 1.0, %v669_v33 }
 0x27a   :  { %v285_v39 = vmul.f32 %v283_v34, %v277_v37 }
 0x27b   :  { %v284_v38 = vmul.f32 %v282_v36, %v276_v35 }
 0x27d   :  { %557 = vmatprep.mubr.f32.mxu0 %v284_v38 }
 0x27e   :  { %558 = vmatmul.mubr.f32.vlgmr.msra.gmra.mrb[2].mxu0 %v285_v39 }
 0x351   :  { %v559_v40 = vpop.f32.mrb[2].mxu0 }
 0x352   :  { %378 = vst [vmem:[#allocation8 + $0x8] sm:$0xff] %v559_v40  ;;  %v368_v41 = vpop.f32.mrb[3].mxu0 }
 0x353   :  { %377 = vst [vmem:[#allocation8] sm:$0xff] %v368_v41 }
 0x354   :  { %747 = shalt.err (!%p744_p0)
}
 0x355   :  { %s748_s16 = scalar_lea.hbm %s886_s5, 256 }
 0x356   :  { %p749_p1 = scmp.ne.s32.totalorder %s886_s5, %s748_s16  ;;  %p752_p2 = scmp.lt.u32.totalorder %s748_s16, %s886_s5 }
 0x358   :  { %p754_p3 = pnand %p752_p2, %p749_p1 }
 0x35a   :  { %757 = shalt.err (!%p754_p3)
}
 0x35b   :  { %390 = dma.vmem_to_hbm [thread:$0]  %s385_s1, 256, %s886_s5, [#allocation4], %s766_s30, %s766_s30, %s767_s6  }
 0x35c   :  { %762 = dma.done.wait [#allocation4], 256  }
 0x35d   :  { %763 = vsyncadd [#allocation4], 4294967040 }
 0x35e   :  { %394 = vsyncpa [#allocation3], 1 }
 0x35f   :  { %395 = vsyncpa [#allocation6], 1 }
 0x360   :  { %396 = vsyncpa [#allocation4], 1 }

</bundles_post_ra>
